<compile_context>
chip_gen: v7x
topology: tpu7x:2x2x1
jax: 0.10.0
libtpu: 0.0.40
codegen_flags: <defaults>
</compile_context>

<pallas_src>
import functools

import jax
import jax.numpy as jnp
from jax.experimental import pallas as pl
from jax.experimental.pallas import tpu as pltpu


def _round_up(a, b):
    return (a + b - 1) // b * b


def _choose_tile_m(m):
    # m is always a multiple of 8 (batch padded to 8).
    for cand in (512, 256, 128, 64, 32, 16, 8):
        if m % cand == 0:
            return cand
    return m


# ---------------------------------------------------------------------------
# Generic batched linear kernel:  out = act(X @ W^T + b)
# Used for the time-parallel input projection (relu) and output projection.
# Grid tiles the (large) M axis; K and N stay resident in VMEM.
# ---------------------------------------------------------------------------
def _linear_kernel(x_ref, wt_ref, b_ref, o_ref, *, apply_relu):
    acc = jnp.dot(x_ref[...], wt_ref[...], preferred_element_type=jnp.float32)
    acc = acc + b_ref[...]
    if apply_relu:
        acc = jnp.maximum(acc, 0.0)
    o_ref[...] = acc.astype(o_ref.dtype)


def _linear(x2d, wt, b, *, apply_relu, tm):
    m, k = x2d.shape
    _, n = wt.shape
    return pl.pallas_call(
        functools.partial(_linear_kernel, apply_relu=apply_relu),
        out_shape=jax.ShapeDtypeStruct((m, n), jnp.float32),
        grid=(m // tm,),
        in_specs=[
            pl.BlockSpec((tm, k), lambda i: (i, 0)),   # streamed M tile
            pl.BlockSpec((k, n), lambda i: (0, 0)),    # resident weight
            pl.BlockSpec((1, n), lambda i: (0, 0)),    # resident bias
        ],
        out_specs=pl.BlockSpec((tm, n), lambda i: (i, 0)),
        compiler_params=pltpu.CompilerParams(
            dimension_semantics=("parallel",)),
    )(x2d, wt, b)


# ---------------------------------------------------------------------------
# Serial recurrence kernel: one grid step processes T_BLK timesteps.
#   h_t = relu(h_{t-1} @ U^T + b_U) + A_t
# U^T and the pre-broadcast bias are VMEM-resident (constant index_maps);
# A_t blocks stream in, hidden states stream out, and the running hidden is
# carried in a VMEM-resident output block (accumulator pattern).
# ---------------------------------------------------------------------------
def _recurrence_kernel(h0_ref, a_ref, ut_ref, ub_ref, hid_all_ref, hid_ref,
                       *, t_blk, t_total):
    tb = pl.program_id(0)

    @pl.when(tb == 0)
    def _():
        hid_ref[...] = h0_ref[...]

    h = hid_ref[...]                     # (Bp, Hp) running hidden
    ut = ut_ref[...]                     # (Hp, Hp) resident U^T
    ub = ub_ref[...]                     # (Bp, Hp) resident pre-broadcast bias

    needs_guard = (t_total % t_blk) != 0   # only padded tail steps need masking
    for k in range(t_blk):               # fully unrolled, static slices
        h_new = jnp.maximum(
            jnp.dot(h, ut, preferred_element_type=jnp.float32) + ub, 0.0
        ) + a_ref[k]
        if needs_guard:
            valid = (tb * t_blk + k) < t_total
            h = jnp.where(valid, h_new, h)
        else:
            h = h_new
        hid_all_ref[k] = h.astype(hid_all_ref.dtype)

    hid_ref[...] = h


# ---------------------------------------------------------------------------
# One-time parameter preparation (transpose, pad). Hoisted out of the
# per-call path so no per-step transposes / reshapes hit the XLA graph.
# ---------------------------------------------------------------------------
def prepare_params(W_w, W_b, U_w, U_b, V_w, V_b, *, dtype=jnp.float32):
    """W_w: (H, I), U_w: (H, H), V_w: (O, H); biases 1-D."""
    W_w = jnp.asarray(W_w, dtype)
    U_w = jnp.asarray(U_w, dtype)
    V_w = jnp.asarray(V_w, dtype)
    W_b = jnp.asarray(W_b, dtype)
    U_b = jnp.asarray(U_b, dtype)
    V_b = jnp.asarray(V_b, dtype)

    H, I = W_w.shape
    O = V_w.shape[0]
    Hp = _round_up(H, 128)
    Ip = _round_up(I, 128)
    Op = _round_up(O, 128)

    wt = jnp.zeros((Ip, Hp), dtype).at[:I, :H].set(W_w.T)
    wb = jnp.zeros((1, Hp), dtype).at[0, :H].set(W_b)
    ut = jnp.zeros((Hp, Hp), dtype).at[:H, :H].set(U_w.T)
    ub = jnp.zeros((1, Hp), dtype).at[0, :H].set(U_b)
    vt = jnp.zeros((Hp, Op), dtype).at[:H, :O].set(V_w.T)
    vb = jnp.zeros((1, Op), dtype).at[0, :O].set(V_b)

    weights = {"wt": wt, "wb": wb, "ut": ut, "ub": ub, "vt": vt, "vb": vb}
    return {"weights": weights, "dims": (I, H, O, Ip, Hp, Op)}


# ---------------------------------------------------------------------------
# Sequence forward.
#   xs: (T, B, I), h0: (B, H)  ->  outputs (T, B, O), final hidden (B, H)
# ---------------------------------------------------------------------------
@functools.partial(jax.jit, static_argnames=("dims",))
def _rnn_sequence_impl(w, xs, h0, *, dims):
    I, H, O, Ip, Hp, Op = dims          # Python ints (static)
    T, B, I_in = xs.shape
    assert I_in == I                     # static shapes -> plain Python check
    Bp = _round_up(B, 8)

    t_blk = min(16, T)                   # timesteps per grid step
    Tp = _round_up(T, t_blk)

    # Pad streams once per call (lane-dense 128, sublane 8).
    # TODO(synk): for long sequences, supply pre-padded xs to avoid this copy.
    xs_p = jnp.zeros((Tp, Bp, Ip), jnp.float32).at[:T, :B, :I].set(
        xs.astype(jnp.float32))
    h0_p = jnp.zeros((Bp, Hp), jnp.float32).at[:B, :H].set(
        h0.astype(jnp.float32))
    ub_b = jnp.broadcast_to(w["ub"].astype(jnp.float32), (Bp, Hp))

    M = Tp * Bp
    tm = _choose_tile_m(M)

    # --- Stage 1: time-parallel input projection  A = relu(X W^T + b_W) ----
    a2d = _linear(xs_p.reshape(M, Ip), w["wt"], w["wb"],
                  apply_relu=True, tm=tm)
    a = a2d.reshape(Tp, Bp, Hp)

    # --- Stage 2: serial recurrence (only the unavoidable Hp x Hp GEMM) ----
    hid_all, hid_final = pl.pallas_call(
        functools.partial(_recurrence_kernel, t_blk=t_blk, t_total=T),
        out_shape=(jax.ShapeDtypeStruct((Tp, Bp, Hp), jnp.float32),
                   jax.ShapeDtypeStruct((Bp, Hp), jnp.float32)),
        grid=(Tp // t_blk,),
        in_specs=[
            pl.BlockSpec((Bp, Hp), lambda t: (0, 0)),           # h0 (resident)
            pl.BlockSpec((t_blk, Bp, Hp), lambda t: (t, 0, 0)),  # A chunk
            pl.BlockSpec((Hp, Hp), lambda t: (0, 0)),           # U^T (resident)
            pl.BlockSpec((Bp, Hp), lambda t: (0, 0)),           # U bias (resident)
        ],
        out_specs=(
            pl.BlockSpec((t_blk, Bp, Hp), lambda t: (t, 0, 0)),  # hidden chunk
            pl.BlockSpec((Bp, Hp), lambda t: (0, 0)),            # carried hidden
        ),
        compiler_params=pltpu.CompilerParams(
            dimension_semantics=("arbitrary",)),   # T is a recurrence
    )(h0_p, a, w["ut"], ub_b)

    # --- Stage 3: time-parallel output projection  out = H V^T + b_V -------
    out2d = _linear(hid_all.reshape(M, Hp), w["vt"], w["vb"],
                    apply_relu=False, tm=tm)
    outs = out2d.reshape(Tp, Bp, Op)

    return outs[:T, :B, :O], hid_final[:B, :H]


def rnn_sequence(params, xs, h0):
    return _rnn_sequence_impl(params["weights"], xs, h0, dims=params["dims"])


# Single-step forward matching torch RNN.forward(X, pre_hidden) -> (out, hidden)
def rnn_forward(params, x, pre_hidden):
    outs, hidden = rnn_sequence(params, x[None], pre_hidden)
    return outs[0], hidden


# ---------------------------------------------------------------------------
# Reference + init helpers
# ---------------------------------------------------------------------------
def _torch_linear_init(key, out_features, in_features):
    kw, kb = jax.random.split(key)
    bound = 1.0 / jnp.sqrt(jnp.float32(in_features))
    w = jax.random.uniform(kw, (out_features, in_features), jnp.float32, -bound, bound)
    b = jax.random.uniform(kb, (out_features,), jnp.float32, -bound, bound)
    return w, b


def _reference_step(x, h, W_w, W_b, U_w, U_b, V_w, V_b):
    h1 = jnp.maximum(h @ U_w.T + U_b, 0.0)
    h2 = jnp.maximum(x @ W_w.T + W_b, 0.0)
    hidden = h1 + h2
    output = hidden @ V_w.T + V_b
    return output, hidden


def _reference_sequence(xs, h0, *weights):
    h = h0
    outs = []
    for t in range(xs.shape[0]):
        o, h = _reference_step(xs[t], h, *weights)
        outs.append(o)
    return jnp.stack(outs), h


if __name__ == "__main__":
    jax.config.update("jax_default_matmul_precision", "highest")

    input_size, hidden_size, output_size = 16, 32, 8
    batch, seq_len = 2, 8

    key = jax.random.PRNGKey(0)
    k_x, k_h, k_w, k_u, k_v = jax.random.split(key, 5)

    xs = jax.random.normal(k_x, (seq_len, batch, input_size), jnp.float32)
    h0 = jax.random.normal(k_h, (batch, hidden_size), jnp.float32)

    W_w, W_b = _torch_linear_init(k_w, hidden_size, input_size)
    U_w, U_b = _torch_linear_init(k_u, hidden_size, hidden_size)
    V_w, V_b = _torch_linear_init(k_v, output_size, hidden_size)
    weights = (W_w, W_b, U_w, U_b, V_w, V_b)

    params = prepare_params(*weights)   # transposes / padding hoisted out of forward

    # --- single-step forward (matches torch RNN.forward semantics) ---
    out1, hid1 = rnn_forward(params, xs[0], h0)
    jax.block_until_ready((out1, hid1))
    ref_out1, ref_hid1 = _reference_step(xs[0], h0, *weights)
    assert jnp.allclose(out1, ref_out1, atol=1e-3, rtol=1e-3), \
        float(jnp.max(jnp.abs(out1 - ref_out1)))
    assert jnp.allclose(hid1, ref_hid1, atol=1e-3, rtol=1e-3), \
        float(jnp.max(jnp.abs(hid1 - ref_hid1)))

    # --- full-sequence forward (recurrence inside one pallas_call) ---
    outs, hid = rnn_sequence(params, xs, h0)
    jax.block_until_ready((outs, hid))
    ref_outs, ref_hid = _reference_sequence(xs, h0, *weights)
    assert jnp.allclose(outs, ref_outs, atol=2e-3, rtol=2e-3), \
        float(jnp.max(jnp.abs(outs - ref_outs)))
    assert jnp.allclose(hid, ref_hid, atol=2e-3, rtol=2e-3), \
        float(jnp.max(jnp.abs(hid - ref_hid)))

    print("KERNEL_OK")
</pallas_src>

<mosaic_0001>
module attributes {stable_mosaic.version = 11 : i64} {
  func.func @_linear_kernel(%arg0: i32, %arg1: memref<8x128xf32, #tpu.memory_space<vmem>>, %arg2: memref<128x128xf32, #tpu.memory_space<vmem>>, %arg3: memref<1x128xf32, #tpu.memory_space<vmem>>, %arg4: memref<8x128xf32, #tpu.memory_space<vmem>>) attributes {dimension_semantics = [#tpu.dimension_semantics<parallel>], iteration_bounds = array<i64: 1>, scalar_prefetch = 0 : i64, scratch_operands = 0 : i64, tpu.core_type = #tpu.core_type<tc>, window_params = [{transform_indices = @transform_0, window_bounds = array<i64: 8, 128>}, {pipeline_mode = #tpu.pipeline_mode<synchronous>, transform_indices = @transform_1, window_bounds = array<i64: 128, 128>}, {pipeline_mode = #tpu.pipeline_mode<synchronous>, transform_indices = @transform_2, window_bounds = array<i64: 1, 128>}, {transform_indices = @transform_3, window_bounds = array<i64: 8, 128>}]} {
    %c0 = arith.constant 0 : index
    %c0_0 = arith.constant 0 : index
    %0 = vector.load %arg1[%c0, %c0_0] : memref<8x128xf32, #tpu.memory_space<vmem>>, vector<8x128xf32>
    %c0_1 = arith.constant 0 : index
    %c0_2 = arith.constant 0 : index
    %1 = vector.load %arg2[%c0_1, %c0_2] : memref<128x128xf32, #tpu.memory_space<vmem>>, vector<128x128xf32>
    %cst = arith.constant dense<0.000000e+00> : vector<8x128xf32>
    %2 = tpu.matmul %0, %1, %cst {dimension_numbers = #tpu.dot_dimension_numbers<[1], [0], [0], [1], [0, 0, 1, 1], [], []>, precision = #tpu.contract_precision<fp32>} : vector<8x128xf32>, vector<128x128xf32>, vector<8x128xf32> -> vector<8x128xf32>
    %c0_3 = arith.constant 0 : index
    %c0_4 = arith.constant 0 : index
    %3 = vector.load %arg3[%c0_3, %c0_4] : memref<1x128xf32, #tpu.memory_space<vmem>>, vector<1x128xf32>
    %4 = vector.broadcast %3 : vector<1x128xf32> to vector<8x128xf32>
    %5 = arith.addf %2, %4 : vector<8x128xf32>
    %cst_5 = arith.constant 0.000000e+00 : f32
    %6 = vector.broadcast %cst_5 : f32 to vector<8x128xf32>
    %7 = arith.maximumf %5, %6 : vector<8x128xf32>
    %c0_6 = arith.constant 0 : index
    %c0_7 = arith.constant 0 : index
    %8 = vector.load %arg4[%c0_6, %c0_7] : memref<8x128xf32, #tpu.memory_space<vmem>>, vector<8x128xf32>
    tpu.vector_store %arg4[%c0_6, %c0_7], %7 {strides = array<i32>} : memref<8x128xf32, #tpu.memory_space<vmem>>, vector<8x128xf32>,
    return
  }
  func.func @transform_0(%arg0: i32) -> (i32, i32) {
    %c0_i32 = arith.constant 0 : i32
    %c0_i32_0 = arith.constant 0 : i32
    return %arg0, %c0_i32 : i32, i32
  }
  func.func @transform_1(%arg0: i32) -> (i32, i32) {
    %c0_i32 = arith.constant 0 : i32
    %c0_i32_0 = arith.constant 0 : i32
    %c0_i32_1 = arith.constant 0 : i32
    return %c0_i32, %c0_i32_0 : i32, i32
  }
  func.func @transform_2(%arg0: i32) -> (i32, i32) {
    %c0_i32 = arith.constant 0 : i32
    %c0_i32_0 = arith.constant 0 : i32
    %c0_i32_1 = arith.constant 0 : i32
    return %c0_i32, %c0_i32_0 : i32, i32
  }
  func.func @transform_3(%arg0: i32) -> (i32, i32) {
    %c0_i32 = arith.constant 0 : i32
    %c0_i32_0 = arith.constant 0 : i32
    return %arg0, %c0_i32 : i32, i32
  }
}

module attributes {stable_mosaic.version = 11 : i64} {
  func.func @_recurrence_kernel(%arg0: i32, %arg1: memref<8x128xf32, #tpu.memory_space<vmem>>, %arg2: memref<1x8x128xf32, #tpu.memory_space<vmem>>, %arg3: memref<128x128xf32, #tpu.memory_space<vmem>>, %arg4: memref<8x128xf32, #tpu.memory_space<vmem>>, %arg5: memref<1x8x128xf32, #tpu.memory_space<vmem>>, %arg6: memref<8x128xf32, #tpu.memory_space<vmem>>) attributes {dimension_semantics = [#tpu.dimension_semantics<arbitrary>], iteration_bounds = array<i64: 1>, scalar_prefetch = 0 : i64, scratch_operands = 0 : i64, tpu.core_type = #tpu.core_type<tc>, window_params = [{pipeline_mode = #tpu.pipeline_mode<synchronous>, transform_indices = @transform_0, window_bounds = array<i64: 8, 128>}, {transform_indices = @transform_1, window_bounds = array<i64: 1, 8, 128>}, {pipeline_mode = #tpu.pipeline_mode<synchronous>, transform_indices = @transform_2, window_bounds = array<i64: 128, 128>}, {pipeline_mode = #tpu.pipeline_mode<synchronous>, transform_indices = @transform_3, window_bounds = array<i64: 8, 128>}, {transform_indices = @transform_4, window_bounds = array<i64: 1, 8, 128>}, {pipeline_mode = #tpu.pipeline_mode<synchronous>, transform_indices = @transform_5, window_bounds = array<i64: 8, 128>}]} {
    %c0_i32 = arith.constant 0 : i32
    %0 = arith.cmpi eq, %arg0, %c0_i32 : i32
    %1 = arith.extui %0 : i1 to i32
    %c0_i32_0 = arith.constant 0 : i32
    %2 = arith.cmpi ne, %1, %c0_i32_0 : i32
    scf.if %2 {
      %c0_15 = arith.constant 0 : index
      %c0_16 = arith.constant 0 : index
      %17 = vector.load %arg1[%c0_15, %c0_16] : memref<8x128xf32, #tpu.memory_space<vmem>>, vector<8x128xf32>
      %c0_17 = arith.constant 0 : index
      %c0_18 = arith.constant 0 : index
      %18 = vector.load %arg6[%c0_17, %c0_18] : memref<8x128xf32, #tpu.memory_space<vmem>>, vector<8x128xf32>
      tpu.vector_store %arg6[%c0_17, %c0_18], %17 {strides = array<i32>} : memref<8x128xf32, #tpu.memory_space<vmem>>, vector<8x128xf32>,
    } else {
    }
    %c0 = arith.constant 0 : index
    %c0_1 = arith.constant 0 : index
    %3 = vector.load %arg6[%c0, %c0_1] : memref<8x128xf32, #tpu.memory_space<vmem>>, vector<8x128xf32>
    %c0_2 = arith.constant 0 : index
    %c0_3 = arith.constant 0 : index
    %4 = vector.load %arg3[%c0_2, %c0_3] : memref<128x128xf32, #tpu.memory_space<vmem>>, vector<128x128xf32>
    %c0_4 = arith.constant 0 : index
    %c0_5 = arith.constant 0 : index
    %5 = vector.load %arg4[%c0_4, %c0_5] : memref<8x128xf32, #tpu.memory_space<vmem>>, vector<8x128xf32>
    %cst = arith.constant dense<0.000000e+00> : vector<8x128xf32>
    %6 = tpu.matmul %3, %4, %cst {dimension_numbers = #tpu.dot_dimension_numbers<[1], [0], [0], [1], [0, 0, 1, 1], [], []>, precision = #tpu.contract_precision<fp32>} : vector<8x128xf32>, vector<128x128xf32>, vector<8x128xf32> -> vector<8x128xf32>
    %7 = arith.addf %6, %5 : vector<8x128xf32>
    %cst_6 = arith.constant 0.000000e+00 : f32
    %8 = vector.broadcast %cst_6 : f32 to vector<8x128xf32>
    %9 = arith.maximumf %7, %8 : vector<8x128xf32>
    %c0_7 = arith.constant 0 : index
    %c0_8 = arith.constant 0 : index
    %c0_9 = arith.constant 0 : index
    %10 = vector.load %arg2[%c0_7, %c0_8, %c0_9] : memref<1x8x128xf32, #tpu.memory_space<vmem>>, vector<1x8x128xf32>
    %11 = vector.shape_cast %10 : vector<1x8x128xf32> to vector<8x128xf32>
    %12 = arith.addf %9, %11 : vector<8x128xf32>
    %c0_10 = arith.constant 0 : index
    %c0_11 = arith.constant 0 : index
    %c0_12 = arith.constant 0 : index
    %13 = vector.load %arg5[%c0_10, %c0_11, %c0_12] : memref<1x8x128xf32, #tpu.memory_space<vmem>>, vector<1x8x128xf32>
    %14 = vector.shape_cast %13 : vector<1x8x128xf32> to vector<8x128xf32>
    %15 = vector.shape_cast %12 : vector<8x128xf32> to vector<1x8x128xf32>
    tpu.vector_store %arg5[%c0_10, %c0_11, %c0_12], %15 {strides = array<i32>} : memref<1x8x128xf32, #tpu.memory_space<vmem>>, vector<1x8x128xf32>,
    %c0_13 = arith.constant 0 : index
    %c0_14 = arith.constant 0 : index
    %16 = vector.load %arg6[%c0_13, %c0_14] : memref<8x128xf32, #tpu.memory_space<vmem>>, vector<8x128xf32>
    tpu.vector_store %arg6[%c0_13, %c0_14], %12 {strides = array<i32>} : memref<8x128xf32, #tpu.memory_space<vmem>>, vector<8x128xf32>,
    return
  }
  func.func @transform_0(%arg0: i32) -> (i32, i32) {
    %c0_i32 = arith.constant 0 : i32
    %c0_i32_0 = arith.constant 0 : i32
    %c0_i32_1 = arith.constant 0 : i32
    return %c0_i32, %c0_i32_0 : i32, i32
  }
  func.func @transform_1(%arg0: i32) -> (i32, i32, i32) {
    %c0_i32 = arith.constant 0 : i32
    %c0_i32_0 = arith.constant 0 : i32
    %c0_i32_1 = arith.constant 0 : i32
    return %arg0, %c0_i32, %c0_i32_0 : i32, i32, i32
  }
  func.func @transform_2(%arg0: i32) -> (i32, i32) {
    %c0_i32 = arith.constant 0 : i32
    %c0_i32_0 = arith.constant 0 : i32
    %c0_i32_1 = arith.constant 0 : i32
    return %c0_i32, %c0_i32_0 : i32, i32
  }
  func.func @transform_3(%arg0: i32) -> (i32, i32) {
    %c0_i32 = arith.constant 0 : i32
    %c0_i32_0 = arith.constant 0 : i32
    %c0_i32_1 = arith.constant 0 : i32
    return %c0_i32, %c0_i32_0 : i32, i32
  }
  func.func @transform_4(%arg0: i32) -> (i32, i32, i32) {
    %c0_i32 = arith.constant 0 : i32
    %c0_i32_0 = arith.constant 0 : i32
    %c0_i32_1 = arith.constant 0 : i32
    return %arg0, %c0_i32, %c0_i32_0 : i32, i32, i32
  }
  func.func @transform_5(%arg0: i32) -> (i32, i32) {
    %c0_i32 = arith.constant 0 : i32
    %c0_i32_0 = arith.constant 0 : i32
    %c0_i32_1 = arith.constant 0 : i32
    return %c0_i32, %c0_i32_0 : i32, i32
  }
}

module attributes {stable_mosaic.version = 11 : i64} {
  func.func @_linear_kernel(%arg0: i32, %arg1: memref<8x128xf32, #tpu.memory_space<vmem>>, %arg2: memref<128x128xf32, #tpu.memory_space<vmem>>, %arg3: memref<1x128xf32, #tpu.memory_space<vmem>>, %arg4: memref<8x128xf32, #tpu.memory_space<vmem>>) attributes {dimension_semantics = [#tpu.dimension_semantics<parallel>], iteration_bounds = array<i64: 1>, scalar_prefetch = 0 : i64, scratch_operands = 0 : i64, tpu.core_type = #tpu.core_type<tc>, window_params = [{transform_indices = @transform_0, window_bounds = array<i64: 8, 128>}, {pipeline_mode = #tpu.pipeline_mode<synchronous>, transform_indices = @transform_1, window_bounds = array<i64: 128, 128>}, {pipeline_mode = #tpu.pipeline_mode<synchronous>, transform_indices = @transform_2, window_bounds = array<i64: 1, 128>}, {transform_indices = @transform_3, window_bounds = array<i64: 8, 128>}]} {
    %c0 = arith.constant 0 : index
    %c0_0 = arith.constant 0 : index
    %0 = vector.load %arg1[%c0, %c0_0] : memref<8x128xf32, #tpu.memory_space<vmem>>, vector<8x128xf32>
    %c0_1 = arith.constant 0 : index
    %c0_2 = arith.constant 0 : index
    %1 = vector.load %arg2[%c0_1, %c0_2] : memref<128x128xf32, #tpu.memory_space<vmem>>, vector<128x128xf32>
    %cst = arith.constant dense<0.000000e+00> : vector<8x128xf32>
    %2 = tpu.matmul %0, %1, %cst {dimension_numbers = #tpu.dot_dimension_numbers<[1], [0], [0], [1], [0, 0, 1, 1], [], []>, precision = #tpu.contract_precision<fp32>} : vector<8x128xf32>, vector<128x128xf32>, vector<8x128xf32> -> vector<8x128xf32>
    %c0_3 = arith.constant 0 : index
    %c0_4 = arith.constant 0 : index
    %3 = vector.load %arg3[%c0_3, %c0_4] : memref<1x128xf32, #tpu.memory_space<vmem>>, vector<1x128xf32>
    %4 = vector.broadcast %3 : vector<1x128xf32> to vector<8x128xf32>
    %5 = arith.addf %2, %4 : vector<8x128xf32>
    %c0_5 = arith.constant 0 : index
    %c0_6 = arith.constant 0 : index
    %6 = vector.load %arg4[%c0_5, %c0_6] : memref<8x128xf32, #tpu.memory_space<vmem>>, vector<8x128xf32>
    tpu.vector_store %arg4[%c0_5, %c0_6], %5 {strides = array<i32>} : memref<8x128xf32, #tpu.memory_space<vmem>>, vector<8x128xf32>,
    return
  }
  func.func @transform_0(%arg0: i32) -> (i32, i32) {
    %c0_i32 = arith.constant 0 : i32
    %c0_i32_0 = arith.constant 0 : i32
    return %arg0, %c0_i32 : i32, i32
  }
  func.func @transform_1(%arg0: i32) -> (i32, i32) {
    %c0_i32 = arith.constant 0 : i32
    %c0_i32_0 = arith.constant 0 : i32
    %c0_i32_1 = arith.constant 0 : i32
    return %c0_i32, %c0_i32_0 : i32, i32
  }
  func.func @transform_2(%arg0: i32) -> (i32, i32) {
    %c0_i32 = arith.constant 0 : i32
    %c0_i32_0 = arith.constant 0 : i32
    %c0_i32_1 = arith.constant 0 : i32
    return %c0_i32, %c0_i32_0 : i32, i32
  }
  func.func @transform_3(%arg0: i32) -> (i32, i32) {
    %c0_i32 = arith.constant 0 : i32
    %c0_i32_0 = arith.constant 0 : i32
    return %arg0, %c0_i32 : i32, i32
  }
}

</mosaic_0001>

<bundles_post_ra>
// kernel: _rnn_sequence_impl.3
= control target key start
LH: loop header
LB: loop body
LE: loop exit
PB: predicated region body
PF: predicated region fallthrough
CT: control target
= control target key end

     0   :  { %8 = vsyncpa [#allocation3], 0  ;;  %s1197_s12 = smov [#allocation2]   ;;  %s1491_s0 = inlined_call_operand.vmem [shape: f32[8,128], index: 0, kind: input, shape index: {}]   ;;  %s1492_s1 = inlined_call_operand.hbm [shape: f32[128,128], index: 1, kind: input, shape index: {}]   ;;  %s1493_s2 = inlined_call_operand.vmem [shape: f32[1,128], index: 2, kind: input, shape index: {}]   ;;  %s1494_s3 = inlined_call_operand.vmem [shape: f32[8,128], index: 3, kind: output, shape index: {}]  }
   0x1   :  { %s16_s13 = sshll.u32 %s1197_s12, 4  ;;  %s1173_s16 = scalar_lea.hbm %s1492_s1, 2048  ;;  %s17_s13 = int_to_ptr.vmem [resolvable:$true] %s16_s13 }
   0x2   :  { %p1174_p0 = scmp.ne.s32.totalorder %s1492_s1, %s1173_s16  ;;  %p1177_p1 = scmp.lt.u32.totalorder %s1173_s16, %s1492_s1 }
   0x4   :  { %p1179_p2 = pnand %p1177_p1, %p1174_p0 }
   0x6   :  { %1182 = shalt.err (!%p1179_p2)
}
   0x7   :  { %s1183_s21 = scalar_lea.vmem %s17_s13, 2048  ;;  %p1188_p4 = scmp.lt.s32.totalorder %s17_s13, %s17_s13 }
   0x8   :  { %p1184_p3 = scmp.ne.s32.totalorder %s17_s13, %s1183_s21  ;;  %p1189_p5 = scmp.lt.s32.totalorder %s1183_s21, %s1183_s21 }
   0xa   :  { %p1190_p6 = por %p1189_p5, %p1188_p4 }
   0xc   :  { %p1191_p7 = pnand %p1190_p6, %p1184_p3 }
   0xe   :  { %1194 = shalt.err (!%p1191_p7)
}
   0xf   :  { %s1198_s22 = smov 128   ;;  %s1199_s23 = smov 8  }
  0x10   :  { %22 = dma.hbm_to_vmem [thread:$0]  %s1492_s1, 2048, %s17_s13, [#allocation3], %s1198_s22, %s1198_s22, %s1199_s23  }
  0x11   :  { %1195 = dma.done.wait [#allocation3], 2048  }
  0x12   :  { %1196 = vsyncadd [#allocation3], 4294965248  ;;  %v1200_v0 = vmov 0.0|0.0   ;;  %vm1201_vm0 = vmmov 0   ;;  %v1202_v1 = vmov 0.0   ;;  %v29_v2 = vld [vmem:[#allocation2] sm:$0xff] }
  0x13   :  { %1013 = vmatprep.subr.bf16.mxu1 %v1200_v0  ;;  %1085 = vmatprep.subr.bf16.mxu0 %v1200_v0  ;;  %v30_v3 = vld [vmem:[#allocation2 + $0x8] sm:$0xff]  ;;  %v31_v4 = vld [vmem:[#allocation2 + $0x10] sm:$0xff]  ;;  %v53_v5 = vand.u32 4294901760, %v29_v2  ;;  %v32_v7 = vld [vmem:[#allocation2 + $0x18] sm:$0xff] }
  0x14   :  { %835 = vmatprep.mubr.msk.f32.mxu1 %vm1201_vm0, %v1202_v1  ;;  %940 = vmatprep.mubr.msk.f32.mxu0 %vm1201_vm0, %v1202_v1  ;;  %v56_v6 = vand.u32 4294901760, %v30_v3  ;;  %v59_v8 = vand.u32 4294901760, %v31_v4  ;;  %v62_v9 = vand.u32 4294901760, %v32_v7  ;;  %v33_v10 = vld [vmem:[#allocation2 + $0x20] sm:$0xff]  ;;  %v34_v11 = vld [vmem:[#allocation2 + $0x28] sm:$0xff]  ;;  %v35_v16 = vld [vmem:[#allocation2 + $0x30] sm:$0xff] }
  0x15   :  { %v65_v14 = vand.u32 4294901760, %v33_v10  ;;  %v68_v15 = vand.u32 4294901760, %v34_v11  ;;  %v36_v17 = vld [vmem:[#allocation2 + $0x38] sm:$0xff]  ;;  %v71_v19 = vand.u32 4294901760, %v35_v16  ;;  %v1255_v21 = vld [vmem:[#allocation2 + $0x40] sm:$0xff]  ;;  %v1257_v22 = vld [vmem:[#allocation2 + $0x48] sm:$0xff]  ;;  %v1274_v29 = vsub.f32 %v29_v2, %v53_v5 }
  0x16   :  { %v1241_v12 = vpack.c.bf16 %v56_v6, %v53_v5  ;;  %v1245_v13 = vpack.c.bf16 %v62_v9, %v59_v8  ;;  %v74_v20 = vand.u32 4294901760, %v36_v17  ;;  %v77_v24 = vand.u32 4294901760, %v1255_v21  ;;  %v28_v26 = vld [vmem:[%s1491_s0] sm:$0xff]  ;;  %v1270_v27 = vld [vmem:[#allocation2 + $0x50] sm:$0xff]  ;;  %v1272_v28 = vld [vmem:[#allocation2 + $0x58] sm:$0xff] }
  0x17   :  { %v1251_v18 = vpack.c.bf16 %v68_v15, %v65_v14  ;;  %v80_v25 = vand.u32 4294901760, %v1257_v22  ;;  %v1276_v30 = vand.u32 4294901760, %v28_v26  ;;  %v1278_v31 = vsub.f32 %v30_v3, %v56_v6  ;;  %v1286_v35 = vld [vmem:[#allocation2 + $0x60] sm:$0xff]  ;;  %v1290_v36 = vld [vmem:[#allocation2 + $0x68] sm:$0xff]  ;;  %v1309_v43 = vld [vmem:[#allocation2 + $0x70] sm:$0xff] }
  0x18   :  { %1015 = vmatpush3.bf16.msra.mxu1 %v1241_v12  ;;  %1087 = vmatpush3.bf16.msra.mxu0 %v1241_v12  ;;  %v1261_v23 = vpack.c.bf16 %v74_v20, %v71_v19  ;;  %v83_v33 = vand.u32 4294901760, %v1270_v27  ;;  %v86_v34 = vand.u32 4294901760, %v1272_v28  ;;  %v1292_v37 = vsub.f32 %v31_v4, %v59_v8  ;;  %v1311_v44 = vld [vmem:[#allocation2 + $0x78] sm:$0xff] }
  0x19   :  { %1016 = vmatprep.subr.bf16.mxu1 %v1200_v0  ;;  %1088 = vmatprep.subr.bf16.mxu0 %v1200_v0  ;;  %v1282_v32 = vpack.c.bf16 %v80_v25, %v77_v24  ;;  %v1294_v38 = vsub.f32 %v32_v7, %v62_v9  ;;  %v89_v39 = vand.u32 4294901760, %v1286_v35  ;;  %v1298_v40 = vsub.f32 %v28_v26, %v1276_v30 }
  0x1a   :  { %v1306_v41 = vpack.c.bf16 %v86_v34, %v83_v33  ;;  %v92_v42 = vand.u32 4294901760, %v1290_v36  ;;  %v146_v45 = vand.u32 4294901760, %v1274_v29  ;;  %v153_v46 = vand.u32 4294901760, %v1278_v31 }
  0x1b   :  { %v1317_v47 = vsub.f32 %v33_v10, %v65_v14  ;;  %v1319_v48 = vsub.f32 %v34_v11, %v68_v15  ;;  %v95_v49 = vand.u32 4294901760, %v1309_v43  ;;  %v98_v50 = vand.u32 4294901760, %v1311_v44 }
  0x1c   :  { %1018 = vmatpush3.bf16.msra.mxu1 %v1245_v13  ;;  %1090 = vmatpush3.bf16.msra.mxu0 %v1245_v13  ;;  %v135_v51 = vand.u32 4294901760, %v1298_v40  ;;  %v160_v52 = vand.u32 4294901760, %v1292_v37  ;;  %v1331_v53 = vpack.c.bf16 %v92_v42, %v89_v39  ;;  %v147_v54 = vsub.f32 %v1274_v29, %v146_v45 }
  0x1d   :  { %1019 = vmatprep.subr.bf16.mxu1 %v1200_v0  ;;  %1091 = vmatprep.subr.bf16.mxu0 %v1200_v0  ;;  %v154_v55 = vsub.f32 %v1278_v31, %v153_v46  ;;  %v167_v56 = vand.u32 4294901760, %v1294_v38  ;;  %v1338_v57 = vsub.f32 %v35_v16, %v71_v19  ;;  %v1340_v58 = vsub.f32 %v36_v17, %v74_v20 }
  0x1e   :  { %v136_v59 = vsub.f32 %v1298_v40, %v135_v51  ;;  %v161_v60 = vsub.f32 %v1292_v37, %v160_v52  ;;  %v174_v61 = vand.u32 4294901760, %v1317_v47  ;;  %v181_v62 = vand.u32 4294901760, %v1319_v48 }
  0x1f   :  { %v1352_v63 = vpack.c.bf16 %v98_v50, %v95_v49  ;;  %v148_v2 = vand.u32 4294901760, %v147_v54  ;;  %v155_v3 = vand.u32 4294901760, %v154_v55  ;;  %v168_v4 = vsub.f32 %v1294_v38, %v167_v56 }
  0x20   :  { %1021 = vmatpush3.bf16.msra.mxu1 %v1251_v18  ;;  %1093 = vmatpush3.bf16.msra.mxu0 %v1251_v18  ;;  %v1358_v5 = vsub.f32 %v1255_v21, %v77_v24  ;;  %v1361_v6 = vsub.f32 %v1257_v22, %v80_v25  ;;  %v1110_v7 = vpack.c.bf16 %v153_v46, %v146_v45  ;;  %v137_v8 = vand.u32 4294901760, %v136_v59 }
  0x21   :  { %1022 = vmatprep.subr.bf16.mxu1 %v1200_v0  ;;  %1094 = vmatprep.subr.bf16.mxu0 %v1200_v0  ;;  %v162_v9 = vand.u32 4294901760, %v161_v60  ;;  %v175_v10 = vsub.f32 %v1317_v47, %v174_v61  ;;  %v182_v11 = vsub.f32 %v1319_v48, %v181_v62  ;;  %v1038_v14 = vpack.c.bf16 %v155_v3, %v148_v2 }
  0x22   :  { %v169_v15 = vand.u32 4294901760, %v168_v4  ;;  %v188_v16 = vand.u32 4294901760, %v1338_v57  ;;  %v195_v17 = vand.u32 4294901760, %v1340_v58  ;;  %v1374_v19 = vsub.f32 %v1270_v27, %v83_v33 }
  0x23   :  { %v1379_v20 = vsub.f32 %v1272_v28, %v86_v34  ;;  %v1113_v21 = vpack.c.bf16 %v167_v56, %v160_v52  ;;  %v176_v22 = vand.u32 4294901760, %v175_v10  ;;  %v183_v24 = vand.u32 4294901760, %v182_v11 }
  0x24   :  { %1024 = vmatpush3.bf16.msra.mxu1 %v1261_v23  ;;  %1096 = vmatpush3.bf16.msra.mxu0 %v1261_v23  ;;  %v202_v25 = vand.u32 4294901760, %v1358_v5  ;;  %v1041_v26 = vpack.c.bf16 %v169_v15, %v162_v9  ;;  %v189_v45 = vsub.f32 %v1338_v57, %v188_v16  ;;  %v196_v27 = vsub.f32 %v1340_v58, %v195_v17 }
  0x25   :  { %1025 = vmatprep.subr.bf16.mxu1 %v1200_v0  ;;  %1097 = vmatprep.subr.bf16.mxu0 %v1200_v0  ;;  %v209_v33 = vand.u32 4294901760, %v1361_v6  ;;  %v1390_v28 = vsub.f32 %v1286_v35, %v89_v39  ;;  %v1395_v34 = vsub.f32 %v1290_v36, %v92_v42  ;;  %v1044_v46 = vpack.c.bf16 %v183_v24, %v176_v22 }
  0x26   :  { %v203_v52 = vsub.f32 %v1358_v5, %v202_v25  ;;  %v216_v54 = vand.u32 4294901760, %v1374_v19  ;;  %v190_v35 = vand.u32 4294901760, %v189_v45  ;;  %v197_v39 = vand.u32 4294901760, %v196_v27 }
  0x27   :  { %v210_v55 = vsub.f32 %v1361_v6, %v209_v33  ;;  %v223_v36 = vand.u32 4294901760, %v1379_v20  ;;  %v1410_v42 = vsub.f32 %v1309_v43, %v95_v49  ;;  %v1415_v56 = vsub.f32 %v1311_v44, %v98_v50 }
  0x28   :  { %1027 = vmatpush3.bf16.msra.mxu1 %v1282_v32  ;;  %1099 = vmatpush3.bf16.msra.mxu0 %v1282_v32  ;;  %v1119_v59 = vpack.c.bf16 %v195_v17, %v188_v16  ;;  %v204_v60 = vand.u32 4294901760, %v203_v52  ;;  %v1047_v2 = vpack.c.bf16 %v197_v39, %v190_v35  ;;  %v237_v43 = vand.u32 4294901760, %v1395_v34 }
  0x29   :  { %1028 = vmatprep.subr.bf16.mxu1 %v1200_v0  ;;  %1100 = vmatprep.subr.bf16.mxu0 %v1200_v0  ;;  %v211_v3 = vand.u32 4294901760, %v210_v55  ;;  %v224_v4 = vsub.f32 %v1379_v20, %v223_v36  ;;  %v1122_v44 = vpack.c.bf16 %v209_v33, %v202_v25  ;;  %v251_v11 = vand.u32 4294901760, %v1415_v56 }
  0x2a   :  { %v238_v10 = vsub.f32 %v1395_v34, %v237_v43 }
  0x2b   :  { %v225_v9 = vand.u32 4294901760, %v224_v4  ;;  %v252_v22 = vsub.f32 %v1415_v56, %v251_v11 }
  0x2c   :  { %1030 = vmatpush3.bf16.msra.mxu1 %v1306_v41  ;;  %1102 = vmatpush3.bf16.msra.mxu0 %v1306_v41  ;;  %v239_v17 = vand.u32 4294901760, %v238_v10 }
  0x2d   :  { %1031 = vmatprep.subr.bf16.mxu1 %v1200_v0  ;;  %1103 = vmatprep.subr.bf16.mxu0 %v1200_v0  ;;  %v253_v45 = vand.u32 4294901760, %v252_v22 }
  0x30   :  { %1033 = vmatpush3.bf16.msra.mxu1 %v1331_v53  ;;  %1105 = vmatpush3.bf16.msra.mxu0 %v1331_v53 }
  0x31   :  { %1034 = vmatprep.subr.bf16.mxu1 %v1200_v0  ;;  %1106 = vmatprep.subr.bf16.mxu0 %v1200_v0 }
  0x34   :  { %1036 = vmatpush3.bf16.msra.mxu1 %v1352_v63  ;;  %1108 = vmatpush3.bf16.msra.mxu0 %v1352_v63 }
  0x35   :  { %1037 = vmatprep.subr.bf16.mxu1 %v1200_v0  ;;  %1109 = vmatprep.subr.bf16.mxu0 %v1200_v0 }
  0x37   :  { %836 = vmatmul.mubr.f32.vlgmr.msra.gmra.mrb[0].mxu1 %v137_v8  ;;  %941 = vmatmul.mubr.f32.vlgmr.msra.gmra.mrb[0].mxu0 %v135_v51  ;;  %v1116_v51 = vpack.c.bf16 %v181_v62, %v174_v61  ;;  %v217_v61 = vsub.f32 %v1374_v19, %v216_v54  ;;  %v230_v62 = vand.u32 4294901760, %v1390_v28  ;;  %v1050_v8 = vpack.c.bf16 %v211_v3, %v204_v60 }
  0x38   :  { %1039 = vmatpush3.bf16.msra.mxu1 %v1038_v14  ;;  %1111 = vmatpush3.bf16.msra.mxu0 %v1110_v7  ;;  %v244_v7 = vand.u32 4294901760, %v1410_v42  ;;  %v1125_v14 = vpack.c.bf16 %v223_v36, %v216_v54 }
  0x39   :  { %1040 = vmatprep.subr.bf16.mxu1 %v1200_v0  ;;  %1112 = vmatprep.subr.bf16.mxu0 %v1200_v0  ;;  %v218_v49 = vand.u32 4294901760, %v217_v61  ;;  %v231_v50 = vsub.f32 %v1390_v28, %v230_v62  ;;  %v1128_v25 = vpack.c.bf16 %v237_v43, %v230_v62 }
  0x3a   :  { %870 = vmatprep.mubr.msk.f32.mxu1 %vm1201_vm0, %v1202_v1  ;;  %975 = vmatprep.mubr.msk.f32.mxu0 %vm1201_vm0, %v1202_v1  ;;  %v1131_v33 = vpack.c.bf16 %v251_v11, %v244_v7 }
  0x3b   :  { %v232_v15 = vand.u32 4294901760, %v231_v50  ;;  %v1053_v16 = vpack.c.bf16 %v225_v9, %v218_v49 }
  0x3c   :  { %1042 = vmatpush3.bf16.msra.mxu1 %v1041_v26  ;;  %1114 = vmatpush3.bf16.msra.mxu0 %v1113_v21  ;;  %v245_v21 = vsub.f32 %v1410_v42, %v244_v7 }
  0x3d   :  { %1043 = vmatprep.subr.bf16.mxu1 %v1200_v0  ;;  %1115 = vmatprep.subr.bf16.mxu0 %v1200_v0  ;;  %v1056_v24 = vpack.c.bf16 %v239_v17, %v232_v15 }
  0x3e   :  { %v246_v26 = vand.u32 4294901760, %v245_v21 }
  0x40   :  { %1045 = vmatpush3.bf16.msra.mxu1 %v1044_v46  ;;  %1117 = vmatpush3.bf16.msra.mxu0 %v1116_v51  ;;  %v1059_v27 = vpack.c.bf16 %v253_v45, %v246_v26  ;;  %v1062_v46 = vpack.c.bf16 %v1278_v31, %v1274_v29  ;;  %v1065_v51 = vpack.c.bf16 %v1294_v38, %v1292_v37  ;;  %v700_v31 = vld [vmem:[%s1493_s2] ss:$0 sm:$0xff] }
  0x41   :  { %1046 = vmatprep.subr.bf16.mxu1 %v1200_v0  ;;  %1118 = vmatprep.subr.bf16.mxu0 %v1200_v0  ;;  %v1068_v29 = vpack.c.bf16 %v1319_v48, %v1317_v47 }
  0x44   :  { %1048 = vmatpush3.bf16.msra.mxu1 %v1047_v2  ;;  %1120 = vmatpush3.bf16.msra.mxu0 %v1119_v59 }
  0x45   :  { %1049 = vmatprep.subr.bf16.mxu1 %v1200_v0  ;;  %1121 = vmatprep.subr.bf16.mxu0 %v1200_v0 }
  0x48   :  { %1051 = vmatpush3.bf16.msra.mxu1 %v1050_v8  ;;  %1123 = vmatpush3.bf16.msra.mxu0 %v1122_v44 }
  0x49   :  { %1052 = vmatprep.subr.bf16.mxu1 %v1200_v0  ;;  %1124 = vmatprep.subr.bf16.mxu0 %v1200_v0 }
  0x4c   :  { %1054 = vmatpush3.bf16.msra.mxu1 %v1053_v16  ;;  %1126 = vmatpush3.bf16.msra.mxu0 %v1125_v14 }
  0x4d   :  { %1055 = vmatprep.subr.bf16.mxu1 %v1200_v0  ;;  %1127 = vmatprep.subr.bf16.mxu0 %v1200_v0 }
  0x50   :  { %1057 = vmatpush3.bf16.msra.mxu1 %v1056_v24  ;;  %1129 = vmatpush3.bf16.msra.mxu0 %v1128_v25 }
  0x51   :  { %1058 = vmatprep.subr.bf16.mxu1 %v1200_v0  ;;  %1130 = vmatprep.subr.bf16.mxu0 %v1200_v0 }
  0x54   :  { %1060 = vmatpush3.bf16.msra.mxu1 %v1059_v27  ;;  %1132 = vmatpush3.bf16.msra.mxu0 %v1131_v33 }
  0x55   :  { %1061 = vmatprep.subr.bf16.mxu1 %v1200_v0  ;;  %1133 = vmatprep.subr.bf16.mxu0 %v1200_v0 }
  0x57   :  { %871 = vmatmul.mubr.f32.vlgmr.msra.gmra.mrb[0].mxu1 %v1276_v30  ;;  %976 = vmatmul.mubr.f32.vlgmr.msra.gmra.mrb[0].mxu0 %v1276_v30 }
  0x58   :  { %1063 = vmatpush3.bf16.msra.mxu1 %v1062_v46  ;;  %1135 = vmatpush3.bf16.msra.mxu0 %v1241_v12  ;;  %v1071_v12 = vpack.c.bf16 %v1340_v58, %v1338_v57 }
  0x59   :  { %1064 = vmatprep.subr.bf16.mxu1 %v1200_v0  ;;  %1136 = vmatprep.subr.bf16.mxu0 %v1200_v0 }
  0x5a   :  { %905 = vmatprep.mubr.msk.f32.mxu1 %vm1201_vm0, %v1202_v1  ;;  %1010 = vmatprep.mubr.msk.f32.mxu0 %vm1201_vm0, %v1202_v1  ;;  %v1074_v1 = vpack.c.bf16 %v1361_v6, %v1358_v5 }
  0x5c   :  { %1066 = vmatpush3.bf16.msra.mxu1 %v1065_v51  ;;  %1138 = vmatpush3.bf16.msra.mxu0 %v1245_v13  ;;  %v1077_v13 = vpack.c.bf16 %v1379_v20, %v1374_v19 }
  0x5d   :  { %1067 = vmatprep.subr.bf16.mxu1 %v1200_v0  ;;  %1139 = vmatprep.subr.bf16.mxu0 %v1200_v0 }
  0x60   :  { %1069 = vmatpush3.bf16.msra.mxu1 %v1068_v29  ;;  %1141 = vmatpush3.bf16.msra.mxu0 %v1251_v18  ;;  %v1080_v18 = vpack.c.bf16 %v1395_v34, %v1390_v28 }
  0x61   :  { %1070 = vmatprep.subr.bf16.mxu1 %v1200_v0  ;;  %1142 = vmatprep.subr.bf16.mxu0 %v1200_v0 }
  0x64   :  { %1072 = vmatpush3.bf16.msra.mxu1 %v1071_v12  ;;  %1144 = vmatpush3.bf16.msra.mxu0 %v1261_v23  ;;  %v1083_v23 = vpack.c.bf16 %v1415_v56, %v1410_v42 }
  0x65   :  { %1073 = vmatprep.subr.bf16.mxu1 %v1200_v0  ;;  %1145 = vmatprep.subr.bf16.mxu0 %v1200_v0 }
  0x68   :  { %1075 = vmatpush3.bf16.msra.mxu1 %v1074_v1  ;;  %1147 = vmatpush3.bf16.msra.mxu0 %v1282_v32 }
  0x69   :  { %1076 = vmatprep.subr.bf16.mxu1 %v1200_v0  ;;  %1148 = vmatprep.subr.bf16.mxu0 %v1200_v0 }
  0x6c   :  { %1078 = vmatpush3.bf16.msra.mxu1 %v1077_v13  ;;  %1150 = vmatpush3.bf16.msra.mxu0 %v1306_v41 }
  0x6d   :  { %1079 = vmatprep.subr.bf16.mxu1 %v1200_v0  ;;  %1151 = vmatprep.subr.bf16.mxu0 %v1200_v0 }
  0x70   :  { %1081 = vmatpush3.bf16.msra.mxu1 %v1080_v18  ;;  %1153 = vmatpush3.bf16.msra.mxu0 %v1331_v53 }
  0x71   :  { %1082 = vmatprep.subr.bf16.mxu1 %v1200_v0  ;;  %1154 = vmatprep.subr.bf16.mxu0 %v1200_v0 }
  0x74   :  { %1084 = vmatpush3.bf16.msra.mxu1 %v1083_v23  ;;  %1156 = vmatpush3.bf16.msra.mxu0 %v1352_v63 }
  0x77   :  { %906 = vmatmul.mubr.f32.vlgmr.msra.gmra.mrb[0].mxu1 %v1298_v40  ;;  %1011 = vmatmul.mubr.f32.vlgmr.msra.gmra.mrb[0].mxu0 %v1276_v30 }
 0x14a   :  { %v394_v32 = vpop.f32.mrb[0].mxu1  ;;  %v689_v37 = vpop.f32.mrb[0].mxu0 }
 0x14b   :  { %v1157_v38 = vadd.f32 %v700_v31, %v394_v32  ;;  %v907_v41 = vpop.f32.mrb[1].mxu1  ;;  %v1012_v47 = vpop.f32.mrb[1].mxu0 }
 0x14d   :  { %v1158_v48 = vadd.f32 %v1157_v38, %v689_v37 }
 0x14f   :  { %v693_v53 = vmax.f32 %v1158_v48, 0.0 }
 0x151   :  { %694 = vst [vmem:[%s1494_s3] sm:$0xff] %v693_v53 }
 0x152   :  { %699 = vsyncpa [#allocation3], 1 }

// kernel: _rnn_sequence_impl.5
= control target key start
LH: loop header
LB: loop body
LE: loop exit
PB: predicated region body
PF: predicated region fallthrough
CT: control target
= control target key end

     0   :  { %v1154_v0 = vmov 0.0|0.0   ;;  %vm1155_vm0 = vmmov 0   ;;  %v1156_v8 = vmov 0.0   ;;  %s1481_s1 = inlined_call_operand.vmem [shape: f32[128,128], index: 1, kind: input, shape index: {}]   ;;  %s1482_s0 = inlined_call_operand.vmem [shape: f32[8,128], index: 0, kind: input, shape index: {}]   ;;  %s1483_s2 = inlined_call_operand.vmem [shape: f32[1,128], index: 2, kind: input, shape index: {}]   ;;  %s1484_s3 = inlined_call_operand.vmem [shape: f32[8,128], index: 3, kind: output, shape index: {}]  }
   0x1   :  { %997 = vmatprep.subr.bf16.mxu1 %v1154_v0  ;;  %1069 = vmatprep.subr.bf16.mxu0 %v1154_v0  ;;  %v15_v1 = vld [vmem:[%s1481_s1] sm:$0xff]  ;;  %v16_v2 = vld [vmem:[%s1481_s1 + $0x8] sm:$0xff]  ;;  %v17_v3 = vld [vmem:[%s1481_s1 + $0x10] sm:$0xff] }
   0x2   :  { %v39_v4 = vand.u32 4294901760, %v15_v1  ;;  %v42_v5 = vand.u32 4294901760, %v16_v2  ;;  %v18_v6 = vld [vmem:[%s1481_s1 + $0x18] sm:$0xff]  ;;  %v45_v7 = vand.u32 4294901760, %v17_v3  ;;  %819 = vmatprep.mubr.msk.f32.mxu1 %vm1155_vm0, %v1156_v8  ;;  %924 = vmatprep.mubr.msk.f32.mxu0 %vm1155_vm0, %v1156_v8  ;;  %v19_v10 = vld [vmem:[%s1481_s1 + $0x20] sm:$0xff]  ;;  %v20_v11 = vld [vmem:[%s1481_s1 + $0x28] sm:$0xff] }
   0x3   :  { %v48_v9 = vand.u32 4294901760, %v18_v6  ;;  %v51_v14 = vand.u32 4294901760, %v19_v10  ;;  %v54_v15 = vand.u32 4294901760, %v20_v11  ;;  %v21_v16 = vld [vmem:[%s1481_s1 + $0x30] sm:$0xff]  ;;  %v22_v17 = vld [vmem:[%s1481_s1 + $0x38] sm:$0xff]  ;;  %v1224_v21 = vld [vmem:[%s1481_s1 + $0x40] sm:$0xff] }
   0x4   :  { %v1201_v12 = vpack.c.bf16 %v42_v5, %v39_v4  ;;  %v57_v19 = vand.u32 4294901760, %v21_v16  ;;  %v60_v20 = vand.u32 4294901760, %v22_v17  ;;  %v1229_v22 = vld [vmem:[%s1481_s1 + $0x48] sm:$0xff]  ;;  %v63_v24 = vand.u32 4294901760, %v1224_v21  ;;  %v14_v26 = vld [vmem:[%s1482_s0] sm:$0xff]  ;;  %v1245_v27 = vld [vmem:[%s1481_s1 + $0x50] sm:$0xff] }
   0x5   :  { %v1205_v13 = vpack.c.bf16 %v48_v9, %v45_v7  ;;  %v1217_v18 = vpack.c.bf16 %v54_v15, %v51_v14  ;;  %v66_v25 = vand.u32 4294901760, %v1229_v22  ;;  %v1250_v28 = vld [vmem:[%s1481_s1 + $0x58] sm:$0xff]  ;;  %v1252_v29 = vsub.f32 %v15_v1, %v39_v4  ;;  %v1267_v35 = vld [vmem:[%s1481_s1 + $0x60] sm:$0xff]  ;;  %v1274_v36 = vld [vmem:[%s1481_s1 + $0x68] sm:$0xff] }
   0x6   :  { %999 = vmatpush3.bf16.msra.mxu1 %v1201_v12  ;;  %1071 = vmatpush3.bf16.msra.mxu0 %v1201_v12  ;;  %v1233_v23 = vpack.c.bf16 %v60_v20, %v57_v19  ;;  %v1254_v30 = vand.u32 4294901760, %v14_v26  ;;  %v1256_v31 = vsub.f32 %v16_v2, %v42_v5  ;;  %v69_v33 = vand.u32 4294901760, %v1245_v27  ;;  %v1296_v43 = vld [vmem:[%s1481_s1 + $0x70] sm:$0xff]  ;;  %v1301_v44 = vld [vmem:[%s1481_s1 + $0x78] sm:$0xff] }
   0x7   :  { %1000 = vmatprep.subr.bf16.mxu1 %v1154_v0  ;;  %1072 = vmatprep.subr.bf16.mxu0 %v1154_v0  ;;  %v1260_v32 = vpack.c.bf16 %v66_v25, %v63_v24  ;;  %v72_v34 = vand.u32 4294901760, %v1250_v28  ;;  %v1276_v37 = vsub.f32 %v17_v3, %v45_v7  ;;  %v1278_v38 = vsub.f32 %v18_v6, %v48_v9 }
   0x8   :  { %v75_v39 = vand.u32 4294901760, %v1267_v35  ;;  %v1282_v40 = vsub.f32 %v14_v26, %v1254_v30  ;;  %v78_v42 = vand.u32 4294901760, %v1274_v36  ;;  %v132_v45 = vand.u32 4294901760, %v1252_v29 }
   0x9   :  { %v1290_v41 = vpack.c.bf16 %v72_v34, %v69_v33  ;;  %v139_v46 = vand.u32 4294901760, %v1256_v31  ;;  %v1307_v47 = vsub.f32 %v19_v10, %v51_v14  ;;  %v1309_v48 = vsub.f32 %v20_v11, %v54_v15 }
   0xa   :  { %1002 = vmatpush3.bf16.msra.mxu1 %v1205_v13  ;;  %1074 = vmatpush3.bf16.msra.mxu0 %v1205_v13  ;;  %v81_v49 = vand.u32 4294901760, %v1296_v43  ;;  %v84_v50 = vand.u32 4294901760, %v1301_v44  ;;  %v121_v51 = vand.u32 4294901760, %v1282_v40  ;;  %v146_v52 = vand.u32 4294901760, %v1276_v37 }
   0xb   :  { %1003 = vmatprep.subr.bf16.mxu1 %v1154_v0  ;;  %1075 = vmatprep.subr.bf16.mxu0 %v1154_v0  ;;  %v1321_v53 = vpack.c.bf16 %v78_v42, %v75_v39  ;;  %v133_v54 = vsub.f32 %v1252_v29, %v132_v45  ;;  %v140_v55 = vsub.f32 %v1256_v31, %v139_v46  ;;  %v153_v56 = vand.u32 4294901760, %v1278_v38 }
   0xc   :  { %v1328_v57 = vsub.f32 %v21_v16, %v57_v19  ;;  %v1330_v58 = vsub.f32 %v22_v17, %v60_v20  ;;  %v122_v59 = vsub.f32 %v1282_v40, %v121_v51  ;;  %v147_v60 = vsub.f32 %v1276_v37, %v146_v52 }
   0xd   :  { %v160_v61 = vand.u32 4294901760, %v1307_v47  ;;  %v167_v62 = vand.u32 4294901760, %v1309_v48  ;;  %v1342_v63 = vpack.c.bf16 %v84_v50, %v81_v49  ;;  %v134_v1 = vand.u32 4294901760, %v133_v54 }
   0xe   :  { %1005 = vmatpush3.bf16.msra.mxu1 %v1217_v18  ;;  %1077 = vmatpush3.bf16.msra.mxu0 %v1217_v18  ;;  %v141_v2 = vand.u32 4294901760, %v140_v55  ;;  %v154_v3 = vsub.f32 %v1278_v38, %v153_v56  ;;  %v1348_v4 = vsub.f32 %v1224_v21, %v63_v24  ;;  %v1351_v5 = vsub.f32 %v1229_v22, %v66_v25 }
   0xf   :  { %1006 = vmatprep.subr.bf16.mxu1 %v1154_v0  ;;  %1078 = vmatprep.subr.bf16.mxu0 %v1154_v0  ;;  %v1094_v6 = vpack.c.bf16 %v139_v46, %v132_v45  ;;  %v123_v7 = vand.u32 4294901760, %v122_v59  ;;  %v148_v9 = vand.u32 4294901760, %v147_v60  ;;  %v161_v10 = vsub.f32 %v1307_v47, %v160_v61 }
  0x10   :  { %v168_v11 = vsub.f32 %v1309_v48, %v167_v62  ;;  %v1022_v14 = vpack.c.bf16 %v141_v2, %v134_v1  ;;  %v155_v15 = vand.u32 4294901760, %v154_v3  ;;  %v174_v16 = vand.u32 4294901760, %v1328_v57 }
  0x11   :  { %v181_v17 = vand.u32 4294901760, %v1330_v58  ;;  %v1364_v19 = vsub.f32 %v1245_v27, %v69_v33  ;;  %v1369_v20 = vsub.f32 %v1250_v28, %v72_v34  ;;  %v1097_v21 = vpack.c.bf16 %v153_v56, %v146_v52 }
  0x12   :  { %1008 = vmatpush3.bf16.msra.mxu1 %v1233_v23  ;;  %1080 = vmatpush3.bf16.msra.mxu0 %v1233_v23  ;;  %v162_v22 = vand.u32 4294901760, %v161_v10  ;;  %v169_v24 = vand.u32 4294901760, %v168_v11  ;;  %v188_v25 = vand.u32 4294901760, %v1348_v4  ;;  %v1025_v26 = vpack.c.bf16 %v155_v15, %v148_v9 }
  0x13   :  { %1009 = vmatprep.subr.bf16.mxu1 %v1154_v0  ;;  %1081 = vmatprep.subr.bf16.mxu0 %v1154_v0  ;;  %v175_v45 = vsub.f32 %v1328_v57, %v174_v16  ;;  %v182_v27 = vsub.f32 %v1330_v58, %v181_v17  ;;  %v195_v33 = vand.u32 4294901760, %v1351_v5  ;;  %v1380_v28 = vsub.f32 %v1267_v35, %v75_v39 }
  0x14   :  { %v1385_v34 = vsub.f32 %v1274_v36, %v78_v42  ;;  %v1028_v46 = vpack.c.bf16 %v169_v24, %v162_v22  ;;  %v189_v52 = vsub.f32 %v1348_v4, %v188_v25  ;;  %v202_v54 = vand.u32 4294901760, %v1364_v19 }
  0x15   :  { %v176_v35 = vand.u32 4294901760, %v175_v45  ;;  %v183_v39 = vand.u32 4294901760, %v182_v27  ;;  %v196_v55 = vsub.f32 %v1351_v5, %v195_v33  ;;  %v209_v36 = vand.u32 4294901760, %v1369_v20 }
  0x16   :  { %1011 = vmatpush3.bf16.msra.mxu1 %v1260_v32  ;;  %1083 = vmatpush3.bf16.msra.mxu0 %v1260_v32  ;;  %v1400_v42 = vsub.f32 %v1296_v43, %v81_v49  ;;  %v1405_v56 = vsub.f32 %v1301_v44, %v84_v50  ;;  %v1103_v59 = vpack.c.bf16 %v181_v17, %v174_v16  ;;  %v190_v60 = vand.u32 4294901760, %v189_v52 }
  0x17   :  { %1012 = vmatprep.subr.bf16.mxu1 %v1154_v0  ;;  %1084 = vmatprep.subr.bf16.mxu0 %v1154_v0  ;;  %v1031_v1 = vpack.c.bf16 %v183_v39, %v176_v35  ;;  %v197_v2 = vand.u32 4294901760, %v196_v55  ;;  %v210_v3 = vsub.f32 %v1369_v20, %v209_v36  ;;  %v223_v43 = vand.u32 4294901760, %v1385_v34 }
  0x18   :  { %v1106_v44 = vpack.c.bf16 %v195_v33, %v188_v25  ;;  %v237_v11 = vand.u32 4294901760, %v1405_v56 }
  0x19   :  { %v211_v9 = vand.u32 4294901760, %v210_v3  ;;  %v224_v10 = vsub.f32 %v1385_v34, %v223_v43 }
  0x1a   :  { %1014 = vmatpush3.bf16.msra.mxu1 %v1290_v41  ;;  %1086 = vmatpush3.bf16.msra.mxu0 %v1290_v41  ;;  %v238_v22 = vsub.f32 %v1405_v56, %v237_v11 }
  0x1b   :  { %1015 = vmatprep.subr.bf16.mxu1 %v1154_v0  ;;  %1087 = vmatprep.subr.bf16.mxu0 %v1154_v0  ;;  %v225_v17 = vand.u32 4294901760, %v224_v10 }
  0x1c   :  { %v239_v45 = vand.u32 4294901760, %v238_v22 }
  0x1e   :  { %1017 = vmatpush3.bf16.msra.mxu1 %v1321_v53  ;;  %1089 = vmatpush3.bf16.msra.mxu0 %v1321_v53 }
  0x1f   :  { %1018 = vmatprep.subr.bf16.mxu1 %v1154_v0  ;;  %1090 = vmatprep.subr.bf16.mxu0 %v1154_v0 }
  0x22   :  { %1020 = vmatpush3.bf16.msra.mxu1 %v1342_v63  ;;  %1092 = vmatpush3.bf16.msra.mxu0 %v1342_v63 }
  0x23   :  { %1021 = vmatprep.subr.bf16.mxu1 %v1154_v0  ;;  %1093 = vmatprep.subr.bf16.mxu0 %v1154_v0 }
  0x25   :  { %820 = vmatmul.mubr.f32.vlgmr.msra.gmra.mrb[0].mxu1 %v123_v7  ;;  %925 = vmatmul.mubr.f32.vlgmr.msra.gmra.mrb[0].mxu0 %v121_v51  ;;  %v1100_v51 = vpack.c.bf16 %v167_v62, %v160_v61  ;;  %v203_v61 = vsub.f32 %v1364_v19, %v202_v54  ;;  %v216_v62 = vand.u32 4294901760, %v1380_v28  ;;  %v1034_v7 = vpack.c.bf16 %v197_v2, %v190_v60 }
  0x26   :  { %1023 = vmatpush3.bf16.msra.mxu1 %v1022_v14  ;;  %1095 = vmatpush3.bf16.msra.mxu0 %v1094_v6  ;;  %v230_v6 = vand.u32 4294901760, %v1400_v42  ;;  %v1109_v14 = vpack.c.bf16 %v209_v36, %v202_v54 }
  0x27   :  { %1024 = vmatprep.subr.bf16.mxu1 %v1154_v0  ;;  %1096 = vmatprep.subr.bf16.mxu0 %v1154_v0  ;;  %v204_v49 = vand.u32 4294901760, %v203_v61  ;;  %v217_v50 = vsub.f32 %v1380_v28, %v216_v62  ;;  %v1112_v25 = vpack.c.bf16 %v223_v43, %v216_v62 }
  0x28   :  { %854 = vmatprep.mubr.msk.f32.mxu1 %vm1155_vm0, %v1156_v8  ;;  %959 = vmatprep.mubr.msk.f32.mxu0 %vm1155_vm0, %v1156_v8  ;;  %v1115_v33 = vpack.c.bf16 %v237_v11, %v230_v6 }
  0x29   :  { %v218_v15 = vand.u32 4294901760, %v217_v50  ;;  %v1037_v16 = vpack.c.bf16 %v211_v9, %v204_v49 }
  0x2a   :  { %1026 = vmatpush3.bf16.msra.mxu1 %v1025_v26  ;;  %1098 = vmatpush3.bf16.msra.mxu0 %v1097_v21  ;;  %v231_v21 = vsub.f32 %v1400_v42, %v230_v6 }
  0x2b   :  { %1027 = vmatprep.subr.bf16.mxu1 %v1154_v0  ;;  %1099 = vmatprep.subr.bf16.mxu0 %v1154_v0  ;;  %v1040_v24 = vpack.c.bf16 %v225_v17, %v218_v15 }
  0x2c   :  { %v232_v26 = vand.u32 4294901760, %v231_v21 }
  0x2e   :  { %1029 = vmatpush3.bf16.msra.mxu1 %v1028_v46  ;;  %1101 = vmatpush3.bf16.msra.mxu0 %v1100_v51  ;;  %v1043_v27 = vpack.c.bf16 %v239_v45, %v232_v26  ;;  %v1046_v46 = vpack.c.bf16 %v1256_v31, %v1252_v29  ;;  %v1049_v51 = vpack.c.bf16 %v1278_v38, %v1276_v37  ;;  %v684_v31 = vld [vmem:[%s1483_s2] ss:$0 sm:$0xff] }
  0x2f   :  { %1030 = vmatprep.subr.bf16.mxu1 %v1154_v0  ;;  %1102 = vmatprep.subr.bf16.mxu0 %v1154_v0  ;;  %v1052_v29 = vpack.c.bf16 %v1309_v48, %v1307_v47 }
  0x32   :  { %1032 = vmatpush3.bf16.msra.mxu1 %v1031_v1  ;;  %1104 = vmatpush3.bf16.msra.mxu0 %v1103_v59 }
  0x33   :  { %1033 = vmatprep.subr.bf16.mxu1 %v1154_v0  ;;  %1105 = vmatprep.subr.bf16.mxu0 %v1154_v0 }
  0x36   :  { %1035 = vmatpush3.bf16.msra.mxu1 %v1034_v7  ;;  %1107 = vmatpush3.bf16.msra.mxu0 %v1106_v44 }
  0x37   :  { %1036 = vmatprep.subr.bf16.mxu1 %v1154_v0  ;;  %1108 = vmatprep.subr.bf16.mxu0 %v1154_v0 }
  0x3a   :  { %1038 = vmatpush3.bf16.msra.mxu1 %v1037_v16  ;;  %1110 = vmatpush3.bf16.msra.mxu0 %v1109_v14 }
  0x3b   :  { %1039 = vmatprep.subr.bf16.mxu1 %v1154_v0  ;;  %1111 = vmatprep.subr.bf16.mxu0 %v1154_v0 }
  0x3e   :  { %1041 = vmatpush3.bf16.msra.mxu1 %v1040_v24  ;;  %1113 = vmatpush3.bf16.msra.mxu0 %v1112_v25 }
  0x3f   :  { %1042 = vmatprep.subr.bf16.mxu1 %v1154_v0  ;;  %1114 = vmatprep.subr.bf16.mxu0 %v1154_v0 }
  0x42   :  { %1044 = vmatpush3.bf16.msra.mxu1 %v1043_v27  ;;  %1116 = vmatpush3.bf16.msra.mxu0 %v1115_v33 }
  0x43   :  { %1045 = vmatprep.subr.bf16.mxu1 %v1154_v0  ;;  %1117 = vmatprep.subr.bf16.mxu0 %v1154_v0 }
  0x45   :  { %855 = vmatmul.mubr.f32.vlgmr.msra.gmra.mrb[0].mxu1 %v1254_v30  ;;  %960 = vmatmul.mubr.f32.vlgmr.msra.gmra.mrb[0].mxu0 %v1254_v30 }
  0x46   :  { %1047 = vmatpush3.bf16.msra.mxu1 %v1046_v46  ;;  %1119 = vmatpush3.bf16.msra.mxu0 %v1201_v12  ;;  %v1055_v12 = vpack.c.bf16 %v1330_v58, %v1328_v57 }
  0x47   :  { %1048 = vmatprep.subr.bf16.mxu1 %v1154_v0  ;;  %1120 = vmatprep.subr.bf16.mxu0 %v1154_v0 }
  0x48   :  { %889 = vmatprep.mubr.msk.f32.mxu1 %vm1155_vm0, %v1156_v8  ;;  %994 = vmatprep.mubr.msk.f32.mxu0 %vm1155_vm0, %v1156_v8  ;;  %v1058_v8 = vpack.c.bf16 %v1351_v5, %v1348_v4 }
  0x4a   :  { %1050 = vmatpush3.bf16.msra.mxu1 %v1049_v51  ;;  %1122 = vmatpush3.bf16.msra.mxu0 %v1205_v13  ;;  %v1061_v13 = vpack.c.bf16 %v1369_v20, %v1364_v19 }
  0x4b   :  { %1051 = vmatprep.subr.bf16.mxu1 %v1154_v0  ;;  %1123 = vmatprep.subr.bf16.mxu0 %v1154_v0 }
  0x4e   :  { %1053 = vmatpush3.bf16.msra.mxu1 %v1052_v29  ;;  %1125 = vmatpush3.bf16.msra.mxu0 %v1217_v18  ;;  %v1064_v18 = vpack.c.bf16 %v1385_v34, %v1380_v28 }
  0x4f   :  { %1054 = vmatprep.subr.bf16.mxu1 %v1154_v0  ;;  %1126 = vmatprep.subr.bf16.mxu0 %v1154_v0 }
  0x52   :  { %1056 = vmatpush3.bf16.msra.mxu1 %v1055_v12  ;;  %1128 = vmatpush3.bf16.msra.mxu0 %v1233_v23  ;;  %v1067_v23 = vpack.c.bf16 %v1405_v56, %v1400_v42 }
  0x53   :  { %1057 = vmatprep.subr.bf16.mxu1 %v1154_v0  ;;  %1129 = vmatprep.subr.bf16.mxu0 %v1154_v0 }
  0x56   :  { %1059 = vmatpush3.bf16.msra.mxu1 %v1058_v8  ;;  %1131 = vmatpush3.bf16.msra.mxu0 %v1260_v32 }
  0x57   :  { %1060 = vmatprep.subr.bf16.mxu1 %v1154_v0  ;;  %1132 = vmatprep.subr.bf16.mxu0 %v1154_v0 }
  0x5a   :  { %1062 = vmatpush3.bf16.msra.mxu1 %v1061_v13  ;;  %1134 = vmatpush3.bf16.msra.mxu0 %v1290_v41 }
  0x5b   :  { %1063 = vmatprep.subr.bf16.mxu1 %v1154_v0  ;;  %1135 = vmatprep.subr.bf16.mxu0 %v1154_v0 }
  0x5e   :  { %1065 = vmatpush3.bf16.msra.mxu1 %v1064_v18  ;;  %1137 = vmatpush3.bf16.msra.mxu0 %v1321_v53 }
  0x5f   :  { %1066 = vmatprep.subr.bf16.mxu1 %v1154_v0  ;;  %1138 = vmatprep.subr.bf16.mxu0 %v1154_v0 }
  0x62   :  { %1068 = vmatpush3.bf16.msra.mxu1 %v1067_v23  ;;  %1140 = vmatpush3.bf16.msra.mxu0 %v1342_v63 }
  0x65   :  { %890 = vmatmul.mubr.f32.vlgmr.msra.gmra.mrb[0].mxu1 %v1282_v40  ;;  %995 = vmatmul.mubr.f32.vlgmr.msra.gmra.mrb[0].mxu0 %v1254_v30 }
 0x138   :  { %v380_v32 = vpop.f32.mrb[0].mxu1  ;;  %v675_v37 = vpop.f32.mrb[0].mxu0 }
 0x139   :  { %v1141_v38 = vadd.f32 %v684_v31, %v380_v32  ;;  %v891_v41 = vpop.f32.mrb[1].mxu1  ;;  %v996_v47 = vpop.f32.mrb[1].mxu0 }
 0x13b   :  { %v1142_v48 = vadd.f32 %v1141_v38, %v675_v37 }
 0x13d   :  { %679 = vst [vmem:[%s1484_s3] sm:$0xff] %v1142_v48 }

// kernel: _rnn_sequence_impl.4
= control target key start
LH: loop header
LB: loop body
LE: loop exit
PB: predicated region body
PF: predicated region fallthrough
CT: control target
= control target key end

     0   :  { %v1166_v0 = vmov 0.0|0.0   ;;  %vm1167_vm0 = vmmov 0   ;;  %v1168_v8 = vmov 0.0   ;;  %s1509_s2 = inlined_call_operand.vmem [shape: f32[128,128], index: 2, kind: input, shape index: {}]   ;;  %s1510_s0 = inlined_call_operand.vmem [shape: f32[8,128], index: 0, kind: input, shape index: {}]   ;;  %s1511_s3 = inlined_call_operand.vmem [shape: f32[8,128], index: 3, kind: input, shape index: {}]   ;;  %s1512_s1 = inlined_call_operand.vmem [shape: f32[1,8,128], index: 1, kind: input, shape index: {}]   ;;  %s1513_s5 = inlined_call_operand.vmem [shape: f32[8,128], index: 5, kind: output, shape index: {1}]   ;;  %s1514_s4 = inlined_call_operand.vmem [shape: f32[1,8,128], index: 4, kind: output, shape index: {0}]  }
   0x1   :  { %1009 = vmatprep.subr.bf16.mxu1 %v1166_v0  ;;  %1081 = vmatprep.subr.bf16.mxu0 %v1166_v0  ;;  %v26_v1 = vld [vmem:[%s1509_s2] sm:$0xff]  ;;  %v27_v2 = vld [vmem:[%s1509_s2 + $0x8] sm:$0xff]  ;;  %v28_v3 = vld [vmem:[%s1509_s2 + $0x10] sm:$0xff] }
   0x2   :  { %v44_v4 = vand.u32 4294901760, %v26_v1  ;;  %v47_v5 = vand.u32 4294901760, %v27_v2  ;;  %v29_v6 = vld [vmem:[%s1509_s2 + $0x18] sm:$0xff]  ;;  %v50_v7 = vand.u32 4294901760, %v28_v3  ;;  %831 = vmatprep.mubr.msk.f32.mxu1 %vm1167_vm0, %v1168_v8  ;;  %936 = vmatprep.mubr.msk.f32.mxu0 %vm1167_vm0, %v1168_v8  ;;  %v30_v10 = vld [vmem:[%s1509_s2 + $0x20] sm:$0xff]  ;;  %v31_v11 = vld [vmem:[%s1509_s2 + $0x28] sm:$0xff] }
   0x3   :  { %v53_v9 = vand.u32 4294901760, %v29_v6  ;;  %v56_v14 = vand.u32 4294901760, %v30_v10  ;;  %v59_v15 = vand.u32 4294901760, %v31_v11  ;;  %v32_v16 = vld [vmem:[%s1509_s2 + $0x30] sm:$0xff]  ;;  %v33_v17 = vld [vmem:[%s1509_s2 + $0x38] sm:$0xff]  ;;  %v1246_v21 = vld [vmem:[%s1509_s2 + $0x40] sm:$0xff] }
   0x4   :  { %v1223_v12 = vpack.c.bf16 %v47_v5, %v44_v4  ;;  %v62_v19 = vand.u32 4294901760, %v32_v16  ;;  %v65_v20 = vand.u32 4294901760, %v33_v17  ;;  %v1251_v22 = vld [vmem:[%s1509_s2 + $0x48] sm:$0xff]  ;;  %v68_v24 = vand.u32 4294901760, %v1246_v21  ;;  %v23_v26 = vld [vmem:[%s1510_s0] sm:$0xff]  ;;  %v1267_v27 = vld [vmem:[%s1509_s2 + $0x50] sm:$0xff] }
   0x5   :  { %v1227_v13 = vpack.c.bf16 %v53_v9, %v50_v7  ;;  %v1239_v18 = vpack.c.bf16 %v59_v15, %v56_v14  ;;  %v71_v25 = vand.u32 4294901760, %v1251_v22  ;;  %v1272_v28 = vld [vmem:[%s1509_s2 + $0x58] sm:$0xff]  ;;  %v1274_v29 = vsub.f32 %v26_v1, %v44_v4  ;;  %v1289_v35 = vld [vmem:[%s1509_s2 + $0x60] sm:$0xff]  ;;  %v1296_v36 = vld [vmem:[%s1509_s2 + $0x68] sm:$0xff] }
   0x6   :  { %1011 = vmatpush3.bf16.msra.mxu1 %v1223_v12  ;;  %1083 = vmatpush3.bf16.msra.mxu0 %v1223_v12  ;;  %v1255_v23 = vpack.c.bf16 %v65_v20, %v62_v19  ;;  %v1276_v30 = vand.u32 4294901760, %v23_v26  ;;  %v1278_v31 = vsub.f32 %v27_v2, %v47_v5  ;;  %v74_v33 = vand.u32 4294901760, %v1267_v27  ;;  %v1318_v43 = vld [vmem:[%s1509_s2 + $0x70] sm:$0xff]  ;;  %v1323_v44 = vld [vmem:[%s1509_s2 + $0x78] sm:$0xff] }
   0x7   :  { %1012 = vmatprep.subr.bf16.mxu1 %v1166_v0  ;;  %1084 = vmatprep.subr.bf16.mxu0 %v1166_v0  ;;  %v1282_v32 = vpack.c.bf16 %v71_v25, %v68_v24  ;;  %v77_v34 = vand.u32 4294901760, %v1272_v28  ;;  %v1298_v37 = vsub.f32 %v28_v3, %v50_v7  ;;  %v1300_v38 = vsub.f32 %v29_v6, %v53_v9 }
   0x8   :  { %v80_v39 = vand.u32 4294901760, %v1289_v35  ;;  %v1304_v40 = vsub.f32 %v23_v26, %v1276_v30  ;;  %v83_v42 = vand.u32 4294901760, %v1296_v36  ;;  %v137_v45 = vand.u32 4294901760, %v1274_v29 }
   0x9   :  { %v1312_v41 = vpack.c.bf16 %v77_v34, %v74_v33  ;;  %v144_v46 = vand.u32 4294901760, %v1278_v31  ;;  %v1329_v47 = vsub.f32 %v30_v10, %v56_v14  ;;  %v1331_v48 = vsub.f32 %v31_v11, %v59_v15 }
   0xa   :  { %1014 = vmatpush3.bf16.msra.mxu1 %v1227_v13  ;;  %1086 = vmatpush3.bf16.msra.mxu0 %v1227_v13  ;;  %v86_v49 = vand.u32 4294901760, %v1318_v43  ;;  %v89_v50 = vand.u32 4294901760, %v1323_v44  ;;  %v126_v51 = vand.u32 4294901760, %v1304_v40  ;;  %v151_v52 = vand.u32 4294901760, %v1298_v37 }
   0xb   :  { %1015 = vmatprep.subr.bf16.mxu1 %v1166_v0  ;;  %1087 = vmatprep.subr.bf16.mxu0 %v1166_v0  ;;  %v1343_v53 = vpack.c.bf16 %v83_v42, %v80_v39  ;;  %v138_v54 = vsub.f32 %v1274_v29, %v137_v45  ;;  %v145_v55 = vsub.f32 %v1278_v31, %v144_v46  ;;  %v158_v56 = vand.u32 4294901760, %v1300_v38 }
   0xc   :  { %v1350_v57 = vsub.f32 %v32_v16, %v62_v19  ;;  %v1352_v58 = vsub.f32 %v33_v17, %v65_v20  ;;  %v127_v59 = vsub.f32 %v1304_v40, %v126_v51  ;;  %v152_v60 = vsub.f32 %v1298_v37, %v151_v52 }
   0xd   :  { %v165_v61 = vand.u32 4294901760, %v1329_v47  ;;  %v172_v62 = vand.u32 4294901760, %v1331_v48  ;;  %v1364_v63 = vpack.c.bf16 %v89_v50, %v86_v49  ;;  %v139_v1 = vand.u32 4294901760, %v138_v54 }
   0xe   :  { %1017 = vmatpush3.bf16.msra.mxu1 %v1239_v18  ;;  %1089 = vmatpush3.bf16.msra.mxu0 %v1239_v18  ;;  %v146_v2 = vand.u32 4294901760, %v145_v55  ;;  %v159_v3 = vsub.f32 %v1300_v38, %v158_v56  ;;  %v1370_v4 = vsub.f32 %v1246_v21, %v68_v24  ;;  %v1373_v5 = vsub.f32 %v1251_v22, %v71_v25 }
   0xf   :  { %1018 = vmatprep.subr.bf16.mxu1 %v1166_v0  ;;  %1090 = vmatprep.subr.bf16.mxu0 %v1166_v0  ;;  %v1106_v6 = vpack.c.bf16 %v144_v46, %v137_v45  ;;  %v128_v7 = vand.u32 4294901760, %v127_v59  ;;  %v153_v9 = vand.u32 4294901760, %v152_v60  ;;  %v166_v10 = vsub.f32 %v1329_v47, %v165_v61 }
  0x10   :  { %v173_v11 = vsub.f32 %v1331_v48, %v172_v62  ;;  %v1034_v14 = vpack.c.bf16 %v146_v2, %v139_v1  ;;  %v160_v15 = vand.u32 4294901760, %v159_v3  ;;  %v179_v16 = vand.u32 4294901760, %v1350_v57 }
  0x11   :  { %v186_v17 = vand.u32 4294901760, %v1352_v58  ;;  %v1386_v19 = vsub.f32 %v1267_v27, %v74_v33  ;;  %v1391_v20 = vsub.f32 %v1272_v28, %v77_v34  ;;  %v1109_v21 = vpack.c.bf16 %v158_v56, %v151_v52 }
  0x12   :  { %1020 = vmatpush3.bf16.msra.mxu1 %v1255_v23  ;;  %1092 = vmatpush3.bf16.msra.mxu0 %v1255_v23  ;;  %v167_v22 = vand.u32 4294901760, %v166_v10  ;;  %v174_v24 = vand.u32 4294901760, %v173_v11  ;;  %v193_v25 = vand.u32 4294901760, %v1370_v4  ;;  %v1037_v26 = vpack.c.bf16 %v160_v15, %v153_v9 }
  0x13   :  { %1021 = vmatprep.subr.bf16.mxu1 %v1166_v0  ;;  %1093 = vmatprep.subr.bf16.mxu0 %v1166_v0  ;;  %v180_v45 = vsub.f32 %v1350_v57, %v179_v16  ;;  %v187_v27 = vsub.f32 %v1352_v58, %v186_v17  ;;  %v200_v33 = vand.u32 4294901760, %v1373_v5  ;;  %v1402_v28 = vsub.f32 %v1289_v35, %v80_v39 }
  0x14   :  { %v1407_v34 = vsub.f32 %v1296_v36, %v83_v42  ;;  %v1040_v46 = vpack.c.bf16 %v174_v24, %v167_v22  ;;  %v194_v52 = vsub.f32 %v1370_v4, %v193_v25  ;;  %v207_v54 = vand.u32 4294901760, %v1386_v19 }
  0x15   :  { %v181_v35 = vand.u32 4294901760, %v180_v45  ;;  %v188_v39 = vand.u32 4294901760, %v187_v27  ;;  %v201_v55 = vsub.f32 %v1373_v5, %v200_v33  ;;  %v214_v36 = vand.u32 4294901760, %v1391_v20 }
  0x16   :  { %1023 = vmatpush3.bf16.msra.mxu1 %v1282_v32  ;;  %1095 = vmatpush3.bf16.msra.mxu0 %v1282_v32  ;;  %v1422_v42 = vsub.f32 %v1318_v43, %v86_v49  ;;  %v1427_v56 = vsub.f32 %v1323_v44, %v89_v50  ;;  %v1115_v59 = vpack.c.bf16 %v186_v17, %v179_v16  ;;  %v195_v60 = vand.u32 4294901760, %v194_v52 }
  0x17   :  { %1024 = vmatprep.subr.bf16.mxu1 %v1166_v0  ;;  %1096 = vmatprep.subr.bf16.mxu0 %v1166_v0  ;;  %v1043_v1 = vpack.c.bf16 %v188_v39, %v181_v35  ;;  %v202_v2 = vand.u32 4294901760, %v201_v55  ;;  %v215_v3 = vsub.f32 %v1391_v20, %v214_v36  ;;  %v228_v43 = vand.u32 4294901760, %v1407_v34 }
  0x18   :  { %v1118_v44 = vpack.c.bf16 %v200_v33, %v193_v25  ;;  %v242_v11 = vand.u32 4294901760, %v1427_v56 }
  0x19   :  { %v216_v9 = vand.u32 4294901760, %v215_v3  ;;  %v229_v10 = vsub.f32 %v1407_v34, %v228_v43 }
  0x1a   :  { %1026 = vmatpush3.bf16.msra.mxu1 %v1312_v41  ;;  %1098 = vmatpush3.bf16.msra.mxu0 %v1312_v41  ;;  %v243_v22 = vsub.f32 %v1427_v56, %v242_v11 }
  0x1b   :  { %1027 = vmatprep.subr.bf16.mxu1 %v1166_v0  ;;  %1099 = vmatprep.subr.bf16.mxu0 %v1166_v0  ;;  %v230_v17 = vand.u32 4294901760, %v229_v10 }
  0x1c   :  { %v244_v45 = vand.u32 4294901760, %v243_v22 }
  0x1e   :  { %1029 = vmatpush3.bf16.msra.mxu1 %v1343_v53  ;;  %1101 = vmatpush3.bf16.msra.mxu0 %v1343_v53 }
  0x1f   :  { %1030 = vmatprep.subr.bf16.mxu1 %v1166_v0  ;;  %1102 = vmatprep.subr.bf16.mxu0 %v1166_v0 }
  0x22   :  { %1032 = vmatpush3.bf16.msra.mxu1 %v1364_v63  ;;  %1104 = vmatpush3.bf16.msra.mxu0 %v1364_v63 }
  0x23   :  { %1033 = vmatprep.subr.bf16.mxu1 %v1166_v0  ;;  %1105 = vmatprep.subr.bf16.mxu0 %v1166_v0 }
  0x25   :  { %832 = vmatmul.mubr.f32.vlgmr.msra.gmra.mrb[0].mxu1 %v128_v7  ;;  %937 = vmatmul.mubr.f32.vlgmr.msra.gmra.mrb[0].mxu0 %v126_v51  ;;  %v1112_v51 = vpack.c.bf16 %v172_v62, %v165_v61  ;;  %v208_v61 = vsub.f32 %v1386_v19, %v207_v54  ;;  %v221_v62 = vand.u32 4294901760, %v1402_v28  ;;  %v1046_v7 = vpack.c.bf16 %v202_v2, %v195_v60 }
  0x26   :  { %1035 = vmatpush3.bf16.msra.mxu1 %v1034_v14  ;;  %1107 = vmatpush3.bf16.msra.mxu0 %v1106_v6  ;;  %v235_v6 = vand.u32 4294901760, %v1422_v42  ;;  %v1121_v14 = vpack.c.bf16 %v214_v36, %v207_v54 }
  0x27   :  { %1036 = vmatprep.subr.bf16.mxu1 %v1166_v0  ;;  %1108 = vmatprep.subr.bf16.mxu0 %v1166_v0  ;;  %v209_v49 = vand.u32 4294901760, %v208_v61  ;;  %v222_v50 = vsub.f32 %v1402_v28, %v221_v62  ;;  %v1124_v25 = vpack.c.bf16 %v228_v43, %v221_v62 }
  0x28   :  { %866 = vmatprep.mubr.msk.f32.mxu1 %vm1167_vm0, %v1168_v8  ;;  %971 = vmatprep.mubr.msk.f32.mxu0 %vm1167_vm0, %v1168_v8  ;;  %v1127_v33 = vpack.c.bf16 %v242_v11, %v235_v6 }
  0x29   :  { %v223_v15 = vand.u32 4294901760, %v222_v50  ;;  %v1049_v16 = vpack.c.bf16 %v216_v9, %v209_v49 }
  0x2a   :  { %1038 = vmatpush3.bf16.msra.mxu1 %v1037_v26  ;;  %1110 = vmatpush3.bf16.msra.mxu0 %v1109_v21  ;;  %v236_v21 = vsub.f32 %v1422_v42, %v235_v6 }
  0x2b   :  { %1039 = vmatprep.subr.bf16.mxu1 %v1166_v0  ;;  %1111 = vmatprep.subr.bf16.mxu0 %v1166_v0  ;;  %v1052_v24 = vpack.c.bf16 %v230_v17, %v223_v15 }
  0x2c   :  { %v237_v26 = vand.u32 4294901760, %v236_v21 }
  0x2e   :  { %1041 = vmatpush3.bf16.msra.mxu1 %v1040_v46  ;;  %1113 = vmatpush3.bf16.msra.mxu0 %v1112_v51  ;;  %v1055_v27 = vpack.c.bf16 %v244_v45, %v237_v26  ;;  %v1058_v46 = vpack.c.bf16 %v1278_v31, %v1274_v29  ;;  %v1061_v51 = vpack.c.bf16 %v1300_v38, %v1298_v37  ;;  %v42_v31 = vld [vmem:[%s1511_s3] sm:$0xff] }
  0x2f   :  { %1042 = vmatprep.subr.bf16.mxu1 %v1166_v0  ;;  %1114 = vmatprep.subr.bf16.mxu0 %v1166_v0  ;;  %v1064_v29 = vpack.c.bf16 %v1331_v48, %v1329_v47 }
  0x32   :  { %1044 = vmatpush3.bf16.msra.mxu1 %v1043_v1  ;;  %1116 = vmatpush3.bf16.msra.mxu0 %v1115_v59 }
  0x33   :  { %1045 = vmatprep.subr.bf16.mxu1 %v1166_v0  ;;  %1117 = vmatprep.subr.bf16.mxu0 %v1166_v0 }
  0x36   :  { %1047 = vmatpush3.bf16.msra.mxu1 %v1046_v7  ;;  %1119 = vmatpush3.bf16.msra.mxu0 %v1118_v44 }
  0x37   :  { %1048 = vmatprep.subr.bf16.mxu1 %v1166_v0  ;;  %1120 = vmatprep.subr.bf16.mxu0 %v1166_v0 }
  0x3a   :  { %1050 = vmatpush3.bf16.msra.mxu1 %v1049_v16  ;;  %1122 = vmatpush3.bf16.msra.mxu0 %v1121_v14 }
  0x3b   :  { %1051 = vmatprep.subr.bf16.mxu1 %v1166_v0  ;;  %1123 = vmatprep.subr.bf16.mxu0 %v1166_v0 }
  0x3e   :  { %1053 = vmatpush3.bf16.msra.mxu1 %v1052_v24  ;;  %1125 = vmatpush3.bf16.msra.mxu0 %v1124_v25 }
  0x3f   :  { %1054 = vmatprep.subr.bf16.mxu1 %v1166_v0  ;;  %1126 = vmatprep.subr.bf16.mxu0 %v1166_v0 }
  0x42   :  { %1056 = vmatpush3.bf16.msra.mxu1 %v1055_v27  ;;  %1128 = vmatpush3.bf16.msra.mxu0 %v1127_v33 }
  0x43   :  { %1057 = vmatprep.subr.bf16.mxu1 %v1166_v0  ;;  %1129 = vmatprep.subr.bf16.mxu0 %v1166_v0 }
  0x45   :  { %867 = vmatmul.mubr.f32.vlgmr.msra.gmra.mrb[0].mxu1 %v1276_v30  ;;  %972 = vmatmul.mubr.f32.vlgmr.msra.gmra.mrb[0].mxu0 %v1276_v30 }
  0x46   :  { %1059 = vmatpush3.bf16.msra.mxu1 %v1058_v46  ;;  %1131 = vmatpush3.bf16.msra.mxu0 %v1223_v12  ;;  %v1067_v12 = vpack.c.bf16 %v1352_v58, %v1350_v57 }
  0x47   :  { %1060 = vmatprep.subr.bf16.mxu1 %v1166_v0  ;;  %1132 = vmatprep.subr.bf16.mxu0 %v1166_v0 }
  0x48   :  { %901 = vmatprep.mubr.msk.f32.mxu1 %vm1167_vm0, %v1168_v8  ;;  %1006 = vmatprep.mubr.msk.f32.mxu0 %vm1167_vm0, %v1168_v8  ;;  %v1070_v8 = vpack.c.bf16 %v1373_v5, %v1370_v4 }
  0x4a   :  { %1062 = vmatpush3.bf16.msra.mxu1 %v1061_v51  ;;  %1134 = vmatpush3.bf16.msra.mxu0 %v1227_v13  ;;  %v1073_v13 = vpack.c.bf16 %v1391_v20, %v1386_v19 }
  0x4b   :  { %1063 = vmatprep.subr.bf16.mxu1 %v1166_v0  ;;  %1135 = vmatprep.subr.bf16.mxu0 %v1166_v0 }
  0x4e   :  { %1065 = vmatpush3.bf16.msra.mxu1 %v1064_v29  ;;  %1137 = vmatpush3.bf16.msra.mxu0 %v1239_v18  ;;  %v1076_v18 = vpack.c.bf16 %v1407_v34, %v1402_v28 }
  0x4f   :  { %1066 = vmatprep.subr.bf16.mxu1 %v1166_v0  ;;  %1138 = vmatprep.subr.bf16.mxu0 %v1166_v0 }
  0x52   :  { %1068 = vmatpush3.bf16.msra.mxu1 %v1067_v12  ;;  %1140 = vmatpush3.bf16.msra.mxu0 %v1255_v23  ;;  %v1079_v23 = vpack.c.bf16 %v1427_v56, %v1422_v42 }
  0x53   :  { %1069 = vmatprep.subr.bf16.mxu1 %v1166_v0  ;;  %1141 = vmatprep.subr.bf16.mxu0 %v1166_v0 }
  0x56   :  { %1071 = vmatpush3.bf16.msra.mxu1 %v1070_v8  ;;  %1143 = vmatpush3.bf16.msra.mxu0 %v1282_v32 }
  0x57   :  { %1072 = vmatprep.subr.bf16.mxu1 %v1166_v0  ;;  %1144 = vmatprep.subr.bf16.mxu0 %v1166_v0 }
  0x5a   :  { %1074 = vmatpush3.bf16.msra.mxu1 %v1073_v13  ;;  %1146 = vmatpush3.bf16.msra.mxu0 %v1312_v41 }
  0x5b   :  { %1075 = vmatprep.subr.bf16.mxu1 %v1166_v0  ;;  %1147 = vmatprep.subr.bf16.mxu0 %v1166_v0 }
  0x5e   :  { %1077 = vmatpush3.bf16.msra.mxu1 %v1076_v18  ;;  %1149 = vmatpush3.bf16.msra.mxu0 %v1343_v53 }
  0x5f   :  { %1078 = vmatprep.subr.bf16.mxu1 %v1166_v0  ;;  %1150 = vmatprep.subr.bf16.mxu0 %v1166_v0  ;;  %v685_v0 = vld [vmem:[%s1512_s1] sm:$0xff] }
  0x62   :  { %1080 = vmatpush3.bf16.msra.mxu1 %v1079_v23  ;;  %1152 = vmatpush3.bf16.msra.mxu0 %v1364_v63 }
  0x65   :  { %902 = vmatmul.mubr.f32.vlgmr.msra.gmra.mrb[0].mxu1 %v1304_v40  ;;  %1007 = vmatmul.mubr.f32.vlgmr.msra.gmra.mrb[0].mxu0 %v1276_v30 }
 0x138   :  { %v385_v32 = vpop.f32.mrb[0].mxu1  ;;  %v680_v37 = vpop.f32.mrb[0].mxu0 }
 0x139   :  { %v1153_v38 = vadd.f32 %v385_v32, %v42_v31  ;;  %v903_v41 = vpop.f32.mrb[1].mxu1  ;;  %v1008_v47 = vpop.f32.mrb[1].mxu0 }
 0x13b   :  { %v1154_v48 = vadd.f32 %v1153_v38, %v680_v37 }
 0x13d   :  { %v684_v53 = vmax.f32 %v1154_v48, 0.0 }
 0x13f   :  { %v686_v57 = vadd.f32 %v685_v0, %v684_v53 }
 0x141   :  { %687 = vst [vmem:[%s1514_s4] sm:$0xff] %v686_v57  ;;  %688 = vst [vmem:[%s1513_s5] sm:$0xff] %v686_v57 }

</bundles_post_ra>
